<compile_context>
chip_gen: v7x
topology: tpu7x:2x2x1
jax: 0.10.0
libtpu: 0.0.40
codegen_flags: <defaults>
</compile_context>

<pallas_src>
import jax
import jax.numpy as jnp
from jax.experimental import pallas as pl
from jax.experimental.pallas import tpu as pltpu

HIDDEN = 128   # fc1 output width (fixed by the module)
OUT = 64       # fc2 / shortcut output width (fixed by the module)


def _head_kernel(x_ref, wa_ref, ba_ref, w2_ref, o_ref):
    # Fused fc1 + shortcut: one matmul against the concatenated (E, 192) weight.
    # z[:, :128]  = fc1 pre-activation (incl. b1)
    # z[:, 128:]  = shortcut pre-activation (incl. bs + folded b2)
    z = jnp.dot(x_ref[...], wa_ref[...],
                preferred_element_type=jnp.float32) + ba_ref[...]
    h = jnp.maximum(z[:, :HIDDEN], 0.0)                       # relu(fc1(x))
    y = jnp.dot(h, w2_ref[...], preferred_element_type=jnp.float32)
    o_ref[...] = (y + z[:, HIDDEN:]).astype(o_ref.dtype)      # fc2(h)+b2+shortcut(x)


def _round_up(n, m):
    return -(-n // m) * m


def residual_projection_head(x, params, *, block_b=2048):
    """x: (..., E) float array  ->  (..., 64)."""
    orig_shape = x.shape
    E = orig_shape[-1]
    x2 = x.reshape(-1, E).astype(jnp.float32)
    B = x2.shape[0]

    # Fuse fc1 and shortcut weights into one lane-aligned matmul operand, and
    # fold the fc2 bias into the shortcut bias (it is added to the same output).
    wa = jnp.concatenate([params['w1'], params['ws']], axis=1)              # (E, 192)
    ba = jnp.concatenate([params['b1'], params['bs'] + params['b2']], 1)    # (1, 192)
    w2 = params['w2']                                                       # (128, 64)
    NA = HIDDEN + OUT

    # Batch tiling: single full block for small B, tile-aligned blocks otherwise.
    if B <= block_b:
        TB, Bp, xp = B, B, x2
    else:
        TB = block_b
        Bp = _round_up(B, TB)
        xp = jnp.pad(x2, ((0, Bp - B), (0, 0)))
    grid = (Bp // TB,)

    # VMEM budget: 2x (input block + output block + weights) + z temp + slack.
    tb_s = _round_up(max(TB, 1), 8)
    blk_x = tb_s * _round_up(E, 128) * 4
    blk_o = tb_s * _round_up(OUT, 128) * 4
    blk_w = (_round_up(E, 8) * _round_up(NA, 128)
             + HIDDEN * _round_up(OUT, 128)
             + 8 * _round_up(NA, 128)) * 4
    z_tmp = tb_s * (_round_up(NA, 128) + _round_up(HIDDEN, 128)) * 4
    vmem_limit = int(min(2 * (blk_x + blk_o + blk_w) + z_tmp + (4 << 20),
                         100 * (1 << 20)))

    cost = pl.CostEstimate(
        flops=2 * Bp * (E * NA + HIDDEN * OUT),
        transcendentals=0,
        bytes_accessed=4 * (Bp * E + Bp * OUT + E * NA + NA + HIDDEN * OUT),
    )

    out = pl.pallas_call(
        _head_kernel,
        out_shape=jax.ShapeDtypeStruct((Bp, OUT), jnp.float32),
        grid=grid,
        in_specs=[
            pl.BlockSpec((TB, E), lambda i: (i, 0)),        # x block (pipelined)
            pl.BlockSpec((E, NA), lambda i: (0, 0)),        # [w1 | ws] (resident)
            pl.BlockSpec((1, NA), lambda i: (0, 0)),        # [b1 | bs+b2]
            pl.BlockSpec((HIDDEN, OUT), lambda i: (0, 0)),  # w2
        ],
        out_specs=pl.BlockSpec((TB, OUT), lambda i: (i, 0)),
        compiler_params=pltpu.CompilerParams(
            dimension_semantics=("parallel",),
            vmem_limit_bytes=vmem_limit),
        cost_estimate=cost,
    )(xp, wa, ba, w2)

    out = out[:B]
    return out.reshape(*orig_shape[:-1], OUT)


# -------------------- deterministic PyTorch-style init ---------------------- #
def init_params(key, num_endmembers):
    """nn.Linear default init (uniform +/- 1/sqrt(fan_in)); weights as (in,out)."""
    ks = jax.random.split(key, 6)

    def linear(kw, kb, fan_in, fan_out):
        bound = 1.0 / (fan_in ** 0.5)
        w = jax.random.uniform(kw, (fan_in, fan_out), jnp.float32, -bound, bound)
        b = jax.random.uniform(kb, (1, fan_out), jnp.float32, -bound, bound)
        return w, b

    w1, b1 = linear(ks[0], ks[1], num_endmembers, HIDDEN)   # fc1
    w2, b2 = linear(ks[2], ks[3], HIDDEN, OUT)              # fc2
    ws, bs = linear(ks[4], ks[5], num_endmembers, OUT)      # shortcut
    return dict(w1=w1, b1=b1, w2=w2, b2=b2, ws=ws, bs=bs)


if __name__ == "__main__":
    num_endmembers = 4
    key = jax.random.PRNGKey(0)
    kx, kp = jax.random.split(key)

    x = jax.random.normal(kx, (2, num_endmembers), jnp.float32)  # (batch, E)
    params = init_params(kp, num_endmembers)

    out = residual_projection_head(x, params)
    jax.block_until_ready(out)
    assert out.shape == (2, OUT)

    # Pure-JAX reference: fc2(relu(fc1(x))) + shortcut(x)
    ref = (jnp.maximum(x @ params['w1'] + params['b1'], 0.0) @ params['w2']
           + params['b2'] + x @ params['ws'] + params['bs'])
    assert jnp.allclose(out, ref, atol=1e-5, rtol=1e-5), "mismatch vs reference"

    print("KERNEL_OK")
</pallas_src>

<mosaic_0001>
module attributes {stable_mosaic.version = 11 : i64} {
  func.func @_head_kernel(%arg0: i32, %arg1: memref<2x4xf32, #tpu.memory_space<vmem>>, %arg2: memref<4x192xf32, #tpu.memory_space<vmem>>, %arg3: memref<1x192xf32, #tpu.memory_space<vmem>>, %arg4: memref<128x64xf32, #tpu.memory_space<vmem>>, %arg5: memref<2x64xf32, #tpu.memory_space<vmem>>) attributes {dimension_semantics = [#tpu.dimension_semantics<parallel>], iteration_bounds = array<i64: 1>, scalar_prefetch = 0 : i64, scratch_operands = 0 : i64, tpu.core_type = #tpu.core_type<tc>, window_params = [{transform_indices = @transform_0, window_bounds = array<i64: 2, 4>}, {pipeline_mode = #tpu.pipeline_mode<synchronous>, transform_indices = @transform_1, window_bounds = array<i64: 4, 192>}, {pipeline_mode = #tpu.pipeline_mode<synchronous>, transform_indices = @transform_2, window_bounds = array<i64: 1, 192>}, {pipeline_mode = #tpu.pipeline_mode<synchronous>, transform_indices = @transform_3, window_bounds = array<i64: 128, 64>}, {transform_indices = @transform_4, window_bounds = array<i64: 2, 64>}]} {
    %c0 = arith.constant 0 : index
    %c0_0 = arith.constant 0 : index
    %0 = vector.load %arg1[%c0, %c0_0] : memref<2x4xf32, #tpu.memory_space<vmem>>, vector<2x4xf32>
    %c0_1 = arith.constant 0 : index
    %c0_2 = arith.constant 0 : index
    %1 = vector.load %arg2[%c0_1, %c0_2] : memref<4x192xf32, #tpu.memory_space<vmem>>, vector<4x192xf32>
    %cst = arith.constant dense<0.000000e+00> : vector<2x192xf32>
    %2 = tpu.matmul %0, %1, %cst {dimension_numbers = #tpu.dot_dimension_numbers<[1], [0], [0], [1], [0, 0, 1, 1], [], []>} : vector<2x4xf32>, vector<4x192xf32>, vector<2x192xf32> -> vector<2x192xf32>
    %c0_3 = arith.constant 0 : index
    %c0_4 = arith.constant 0 : index
    %3 = vector.load %arg3[%c0_3, %c0_4] : memref<1x192xf32, #tpu.memory_space<vmem>>, vector<1x192xf32>
    %4 = vector.broadcast %3 : vector<1x192xf32> to vector<2x192xf32>
    %5 = arith.addf %2, %4 : vector<2x192xf32>
    %6 = vector.extract_strided_slice %5 {offsets = [0, 0], sizes = [2, 128], strides = [1, 1]} : vector<2x192xf32> to vector<2x128xf32>
    %cst_5 = arith.constant 0.000000e+00 : f32
    %7 = vector.broadcast %cst_5 : f32 to vector<2x128xf32>
    %8 = arith.maximumf %6, %7 : vector<2x128xf32>
    %c0_6 = arith.constant 0 : index
    %c0_7 = arith.constant 0 : index
    %9 = vector.load %arg4[%c0_6, %c0_7] : memref<128x64xf32, #tpu.memory_space<vmem>>, vector<128x64xf32>
    %cst_8 = arith.constant dense<0.000000e+00> : vector<2x64xf32>
    %10 = tpu.matmul %8, %9, %cst_8 {dimension_numbers = #tpu.dot_dimension_numbers<[1], [0], [0], [1], [0, 0, 1, 1], [], []>} : vector<2x128xf32>, vector<128x64xf32>, vector<2x64xf32> -> vector<2x64xf32>
    %11 = vector.extract_strided_slice %5 {offsets = [0, 128], sizes = [2, 64], strides = [1, 1]} : vector<2x192xf32> to vector<2x64xf32>
    %12 = arith.addf %10, %11 : vector<2x64xf32>
    %c0_9 = arith.constant 0 : index
    %c0_10 = arith.constant 0 : index
    %13 = vector.load %arg5[%c0_9, %c0_10] : memref<2x64xf32, #tpu.memory_space<vmem>>, vector<2x64xf32>
    tpu.vector_store %arg5[%c0_9, %c0_10], %12 {strides = array<i32>} : memref<2x64xf32, #tpu.memory_space<vmem>>, vector<2x64xf32>,
    return
  }
  func.func @transform_0(%arg0: i32) -> (i32, i32) {
    %c0_i32 = arith.constant 0 : i32
    %c0_i32_0 = arith.constant 0 : i32
    return %arg0, %c0_i32 : i32, i32
  }
  func.func @transform_1(%arg0: i32) -> (i32, i32) {
    %c0_i32 = arith.constant 0 : i32
    %c0_i32_0 = arith.constant 0 : i32
    %c0_i32_1 = arith.constant 0 : i32
    return %c0_i32, %c0_i32_0 : i32, i32
  }
  func.func @transform_2(%arg0: i32) -> (i32, i32) {
    %c0_i32 = arith.constant 0 : i32
    %c0_i32_0 = arith.constant 0 : i32
    %c0_i32_1 = arith.constant 0 : i32
    return %c0_i32, %c0_i32_0 : i32, i32
  }
  func.func @transform_3(%arg0: i32) -> (i32, i32) {
    %c0_i32 = arith.constant 0 : i32
    %c0_i32_0 = arith.constant 0 : i32
    %c0_i32_1 = arith.constant 0 : i32
    return %c0_i32, %c0_i32_0 : i32, i32
  }
  func.func @transform_4(%arg0: i32) -> (i32, i32) {
    %c0_i32 = arith.constant 0 : i32
    %c0_i32_0 = arith.constant 0 : i32
    return %arg0, %c0_i32 : i32, i32
  }
}

</mosaic_0001>

<bundles_post_ra>
// kernel: tpu_custom_call.1
= control target key start
LH: loop header
LB: loop body
LE: loop exit
PB: predicated region body
PF: predicated region fallthrough
CT: control target
= control target key end

     0   :  { %vm38_vm0 = vcmask 1043456   ;;  %v325_v2 = vmov 0.0   ;;  %vm34_vm1 = vcmask 31744   ;;  %v326_v7 = vmov 0.0|0.0   ;;  %s423_s0 = inlined_call_operand.vmem [shape: f32[2,4], index: 0, kind: input, shape index: {}]   ;;  %s424_s1 = inlined_call_operand.vmem [shape: f32[4,192], index: 1, kind: input, shape index: {}]   ;;  %s425_s2 = inlined_call_operand.vmem [shape: f32[1,192], index: 2, kind: input, shape index: {}]   ;;  %s426_s3 = inlined_call_operand.vmem [shape: f32[128,64], index: 3, kind: input, shape index: {}]   ;;  %s427_s4 = inlined_call_operand.hbm [shape: f32[2,64], index: 4, kind: output, shape index: {}]  }
   0x1   :  { %v19_v0 = vld [vmem:[%s424_s1] sm:$0xff]  ;;  %107 = vmatprep.mubr.f32.mxu0 %v325_v2  ;;  %v116_v4 = vld [vmem:[%s426_s3 + $0x8] sm:$0xff]  ;;  %v117_v5 = vld [vmem:[%s426_s3 + $0x10] sm:$0xff]  ;;  %272 = vmatprep.subr.bf16.mxu1 %v326_v7 }
   0x2   :  { %v33_v1 = vcombine.high %v19_v0, %v19_v0  ;;  %v115_v3 = vld [vmem:[%s426_s3] sm:$0xff]  ;;  %v118_v9 = vld [vmem:[%s426_s3 + $0x18] sm:$0xff]  ;;  %v120_v12 = vld [vmem:[%s426_s3 + $0x28] sm:$0xff] }
   0x3   :  { %v18_v6 = vld [vmem:[%s423_s0] sm:$0x3]  ;;  %v273_v8 = vpack.c.bf16 %v116_v4, %v115_v3  ;;  %v276_v10 = vpack.c.bf16 %v118_v9, %v117_v5 }
   0x4   :  { %217 = vmatprep.subr.msk.mxu0 %vm38_vm0, %v33_v1  ;;  %v119_v11 = vld [vmem:[%s426_s3 + $0x20] sm:$0xff] }
   0x5   :  { %218 = vmatpush1.msk.msra.mxu0 %vm38_vm0, %v19_v0  ;;  %274 = vmatpush3.bf16.msra.mxu1 %v273_v8 }
   0x6   :  { %219 = vmatmul.mubr.msk.f32.vlgmr.msra.gmra.mrb[0].mxu0 %vm34_vm1, %v18_v6  ;;  %275 = vmatprep.subr.bf16.mxu1 %v326_v7 }
   0x7   :  { %9 = vsyncpa [#allocation3], 0  ;;  %v279_v13 = vpack.c.bf16 %v120_v12, %v119_v11  ;;  %v121_v14 = vld [vmem:[%s426_s3 + $0x30] sm:$0xff]  ;;  %v122_v15 = vld [vmem:[%s426_s3 + $0x38] sm:$0xff]  ;;  %vm327_vm2 = vmmov 0   ;;  %v22_v29 = vlaneseq  ;;  %vm201_vm3 = vcmask 517120  }
   0x8   :  { %v282_v16 = vpack.c.bf16 %v122_v15, %v121_v14  ;;  %v123_v17 = vld [vmem:[%s426_s3 + $0x40] sm:$0xff]  ;;  %v124_v18 = vld [vmem:[%s426_s3 + $0x48] sm:$0xff]  ;;  %v125_v20 = vld [vmem:[%s426_s3 + $0x50] sm:$0xff]  ;;  %269 = vmatprep.mubr.msk.f32.mxu1 %vm327_vm2, %v325_v2 }
   0x9   :  { %277 = vmatpush3.bf16.msra.mxu1 %v276_v10  ;;  %v285_v19 = vpack.c.bf16 %v124_v18, %v123_v17  ;;  %v126_v21 = vld [vmem:[%s426_s3 + $0x58] sm:$0xff]  ;;  %v127_v23 = vld [vmem:[%s426_s3 + $0x60] sm:$0xff]  ;;  %v128_v24 = vld [vmem:[%s426_s3 + $0x68] sm:$0xff]  ;;  %v23_v30 = vshrl.u32 %v22_v29, 7 }
   0xa   :  { %278 = vmatprep.subr.bf16.mxu1 %v326_v7  ;;  %v288_v22 = vpack.c.bf16 %v126_v21, %v125_v20  ;;  %v291_v25 = vpack.c.bf16 %v128_v24, %v127_v23  ;;  %v129_v26 = vld [vmem:[%s426_s3 + $0x70] sm:$0xff]  ;;  %v130_v27 = vld [vmem:[%s426_s3 + $0x78] sm:$0xff]  ;;  %v20_v32 = vld [vmem:[%s425_s2] sm:$0x3]  ;;  %s328_s3 = smov [#allocation2]  }
   0xb   :  { %v294_v28 = vpack.c.bf16 %v130_v27, %v129_v26  ;;  %v24_v31 = vsub.s32 0, %v23_v30  ;;  %v28_v38 = vsub.s32 1, %v23_v30  ;;  %s209_s1 = sshll.u32 %s328_s3, 4  ;;  %s210_s1 = int_to_ptr.vmem [resolvable:$true] %s209_s1 }
   0xc   :  { %s301_s25 = scalar_lea.vmem %s210_s1, 32  ;;  %p306_p1 = scmp.lt.s32.totalorder %s210_s1, %s210_s1 }
   0xd   :  { %280 = vmatpush3.bf16.msra.mxu1 %v279_v13  ;;  %v25_v33 = vrot.slane %v20_v32, %v24_v31  ;;  %v29_v39 = vrot.slane %v20_v32, %v28_v38  ;;  %p302_p0 = scmp.ne.s32.totalorder %s210_s1, %s301_s25  ;;  %p307_p2 = scmp.lt.s32.totalorder %s301_s25, %s301_s25 }
   0xe   :  { %281 = vmatprep.subr.bf16.mxu1 %v326_v7 }
   0xf   :  { %p308_p3 = por %p307_p2, %p306_p1 }
  0x11   :  { %283 = vmatpush3.bf16.msra.mxu1 %v282_v16  ;;  %p309_p4 = pnand %p308_p3, %p302_p0 }
  0x12   :  { %284 = vmatprep.subr.bf16.mxu1 %v326_v7 }
  0x15   :  { %286 = vmatpush3.bf16.msra.mxu1 %v285_v19 }
  0x16   :  { %287 = vmatprep.subr.bf16.mxu1 %v326_v7 }
  0x19   :  { %289 = vmatpush3.bf16.msra.mxu1 %v288_v22 }
  0x1a   :  { %290 = vmatprep.subr.bf16.mxu1 %v326_v7 }
  0x1d   :  { %292 = vmatpush3.bf16.msra.mxu1 %v291_v25 }
  0x1e   :  { %293 = vmatprep.subr.bf16.mxu1 %v326_v7 }
  0x21   :  { %295 = vmatpush3.bf16.msra.mxu1 %v294_v28 }
  0xd9   :  { %v109_v34 = vpop.f32.mrb[0].mxu0 }
  0xda   :  { %v110_v35 = vadd.f32 %v109_v34, %v25_v33  ;;  %v111_v36 = vpop.f32.mrb[1].mxu0 }
  0xdb   :  { %v112_v40 = vadd.f32 %v111_v36, %v29_v39 }
  0xdc   :  { %v114_v37 = vmax.f32 %v110_v35, 0.0 }
  0xde   :  { %270 = vmatmul.mubr.f32.vlgmr.msra.gmra.mrb[0].mxu1 %v114_v37 }
 0x1b1   :  { %v197_v41 = vpop.f32.mrb[0].mxu1 }
 0x1b2   :  { %v198_v42 = vadd.f32 %v197_v41, %v112_v40  ;;  %v271_v43 = vpop.f32.mrb[1].mxu1 }
 0x1b4   :  { %202 = vst.msk [vmem:[#allocation2] sm:$0x3] %vm201_vm3, %v198_v42 }
 0x1b5   :  { %312 = shalt.err (!%p309_p4)
}
 0x1b6   :  { %s313_s27 = scalar_lea.hbm %s427_s4, 32 }
 0x1b7   :  { %p314_p5 = scmp.ne.s32.totalorder %s427_s4, %s313_s27  ;;  %p317_p6 = scmp.lt.u32.totalorder %s313_s27, %s427_s4 }
 0x1b9   :  { %p319_p7 = pnand %p317_p6, %p314_p5 }
 0x1bb   :  { %322 = shalt.err (!%p319_p7)
}
 0x1bc   :  { %212 = dma.vmem_to_hbm [thread:$0]  %s210_s1, 32, %s427_s4, [#allocation3]  }
 0x1bd   :  { %323 = dma.done.wait [#allocation3], 32  }
 0x1be   :  { %324 = vsyncadd [#allocation3], 4294967264 }
 0x1bf   :  { %216 = vsyncpa [#allocation3], 1 }

</bundles_post_ra>
